<compile_context>
chip_gen: v6e
topology: v6e:2x2x1
jax: 0.10.0
libtpu: 0.0.40
codegen_flags: <defaults>
</compile_context>

<pallas_src>
import functools

import jax
import jax.numpy as jnp
from jax import lax
from jax.experimental import pallas as pl
from jax.experimental.pallas import tpu as pltpu


def _qatt_kernel(x_ref, w1_ref, b1_ref, w2_ref, b2_ref, out_ref, *, compute_dtype):
    """One block of NB batch elements per grid step.

    x_ref   : (NB, T, D)  question features
    w1_ref  : (D, H)      first linear (pre-transposed), b1_ref: (1, H)
    w2_ref  : (H, G)      second linear (pre-transposed), b2_ref: (1, G)
    out_ref : (NB, G*D)   per-glimpse attention-pooled features, glimpse-major
    """
    nb, t, d = x_ref.shape
    g = w2_ref.shape[1]

    x = x_ref[...]                                        # (NB, T, D), f32
    # Merge (NB, T) into the matmul M dimension. T is a multiple of 8
    # (enforced by the wrapper), so this reshape is layout-preserving.
    x2 = x.reshape(nb * t, d)                             # (NB*T, D)

    # --- MLP: Linear(D,H) -> ReLU -> Dropout(eval: identity) -> Linear(H,G)
    h = jnp.dot(x2.astype(compute_dtype), w1_ref[...].astype(compute_dtype),
                preferred_element_type=jnp.float32) + b1_ref[...]
    h = jnp.maximum(h, 0.0)                               # ReLU (f32)
    logits = jnp.dot(h.astype(compute_dtype), w2_ref[...].astype(compute_dtype),
                     preferred_element_type=jnp.float32) + b2_ref[...]
    logits = logits.reshape(nb, t, g)                     # (NB, T, G)

    # --- softmax over T (dim=1 of the (N, T, G) attention maps), stable, f32
    m = jnp.max(logits, axis=1, keepdims=True)            # (NB, 1, G)
    e = jnp.exp(logits - m)
    attn = e / jnp.sum(e, axis=1, keepdims=True)          # (NB, T, G)

    # --- per-glimpse attention-weighted sum over T, batched over NB:
    #     pooled[n, g, d] = sum_t attn[n, t, g] * x[n, t, d]
    pooled = lax.dot_general(
        attn.astype(x.dtype), x,
        dimension_numbers=(((1,), (1,)), ((0,), (0,))),
        preferred_element_type=jnp.float32)               # (NB, G, D)

    # Single lane-dense, full-block store (matches torch.cat glimpse ordering).
    out_ref[...] = pooled.reshape(nb, g * d).astype(out_ref.dtype)


def qatt_forward(ques_feat, w1, b1, w2, b2, *, block_n=8,
                 compute_dtype=jnp.float32,
                 vmem_limit_bytes=32 * 1024 * 1024):
    """ques_feat: (N, T, D); w1: (D, H), b1: (1, H); w2: (H, G), b2: (1, G).

    Returns (N, G*D), matching torch.cat of per-glimpse (N, D) features on dim 1.

    block_n: batch elements per grid step. At production sizes (D ~ 1-2.4k),
    re-derive it against the per-generation VMEM budget (v5e/v6e: 128 MiB,
    v7x: 64 MiB) and use compute_dtype=jnp.bfloat16 on v6e/v7x.
    """
    N, T, D = ques_feat.shape
    H = w1.shape[1]
    G = w2.shape[1]
    if T % 8 != 0:
        # TODO(synk): support ragged/unaligned T via wrapper padding + softmax masking.
        raise ValueError("T must be a multiple of 8.")

    if N <= block_n:
        nb, n_pad = N, N                            # single step; block == full dim
    else:
        nb = max(8, (block_n // 8) * 8)             # keep the out-block sublane-aligned
        n_pad = int(pl.cdiv(N, nb)) * nb

    x = ques_feat
    if n_pad != N:
        # Zero padded rows are harmless: uniform softmax over zero features -> 0 output.
        x = jnp.pad(x, ((0, n_pad - N), (0, 0), (0, 0)))

    fixed2 = lambda i: (0, 0)   # weights/biases: same block every step -> VMEM-resident
    # TODO(synk): at production D, add pipeline_mode=pl.Buffered(1) to the four
    # resident weight/bias specs to halve their VMEM footprint (buys a larger
    # block_n on v7x's 64 MiB VMEM).

    out = pl.pallas_call(
        functools.partial(_qatt_kernel, compute_dtype=compute_dtype),
        out_shape=jax.ShapeDtypeStruct((n_pad, G * D), jnp.float32),
        grid=(n_pad // nb,),
        in_specs=[
            pl.BlockSpec((nb, T, D), lambda i: (i, 0, 0)),   # ques_feat block
            pl.BlockSpec((D, H), fixed2),                    # w1
            pl.BlockSpec((1, H), fixed2),                    # b1
            pl.BlockSpec((H, G), fixed2),                    # w2
            pl.BlockSpec((1, G), fixed2),                    # b2
        ],
        out_specs=pl.BlockSpec((nb, G * D), lambda i: (i, 0)),
        compiler_params=pltpu.CompilerParams(
            dimension_semantics=("parallel",),        # blocked batch axis -> v7x 2-TC sharding
            vmem_limit_bytes=vmem_limit_bytes),       # v5e scoped default is only 16 MiB
    )(x, w1, b1, w2, b2)

    return out[:N] if n_pad != N else out


def qatt_ref(ques_feat, w1, b1, w2, b2):
    """Pure-JAX reference (eval mode: dropout is identity)."""
    h = jnp.maximum(jnp.einsum('ntd,dh->nth', ques_feat, w1) + b1, 0.0)
    logits = jnp.einsum('nth,hg->ntg', h, w2) + b2
    attn = jax.nn.softmax(logits, axis=1)                  # over T
    G = w2.shape[1]
    feats = [jnp.sum(attn[:, :, g:g + 1] * ques_feat, axis=1) for g in range(G)]
    return jnp.concatenate(feats, axis=1)


if __name__ == "__main__":
    # Small shapes consistent with the module:
    #   ques_feat (N, T, LSTM_OUT_SIZE); hidden 512 fixed by the module; G glimpses.
    # N=12 with block_n=8 exercises multi-step grid + batch padding.
    N, T, D = 12, 8, 32
    H, G = 512, 2

    key = jax.random.PRNGKey(0)
    kx, k1, k2, k3, k4 = jax.random.split(key, 5)

    def u(k, shape, fan_in):
        bound = 1.0 / jnp.sqrt(fan_in)
        return jax.random.uniform(k, shape, jnp.float32, -bound, bound)

    ques_feat = jax.random.normal(kx, (N, T, D), jnp.float32)
    w1 = u(k1, (D, H), D)   # nn.Linear weight stored pre-transposed: (in, out)
    b1 = u(k2, (1, H), D)
    w2 = u(k3, (H, G), H)
    b2 = u(k4, (1, G), H)

    ref = qatt_ref(ques_feat, w1, b1, w2, b2)

    # f32 path: strict parity with the PyTorch module.
    out = jax.block_until_ready(qatt_forward(ques_feat, w1, b1, w2, b2, block_n=8))
    assert out.shape == (N, D * G)
    assert jnp.allclose(out, ref, atol=1e-4, rtol=1e-4), "f32 mismatch vs reference"

    # bf16-operand path (production config for v6e/v7x MXU); looser tolerance.
    out_bf16 = jax.block_until_ready(
        qatt_forward(ques_feat, w1, b1, w2, b2, block_n=8,
                     compute_dtype=jnp.bfloat16))
    assert jnp.allclose(out_bf16, ref, atol=5e-2, rtol=5e-2), "bf16 mismatch vs reference"

    print("KERNEL_OK")
</pallas_src>

<mosaic_0001>
module attributes {stable_mosaic.version = 11 : i64} {
  func.func @_qatt_kernel(%arg0: i32, %arg1: memref<8x8x32xf32, #tpu.memory_space<vmem>>, %arg2: memref<32x512xf32, #tpu.memory_space<vmem>>, %arg3: memref<1x512xf32, #tpu.memory_space<vmem>>, %arg4: memref<512x2xf32, #tpu.memory_space<vmem>>, %arg5: memref<1x2xf32, #tpu.memory_space<vmem>>, %arg6: memref<8x64xf32, #tpu.memory_space<vmem>>) attributes {dimension_semantics = [#tpu.dimension_semantics<parallel>], iteration_bounds = array<i64: 2>, scalar_prefetch = 0 : i64, scratch_operands = 0 : i64, tpu.core_type = #tpu.core_type<tc>, window_params = [{transform_indices = @transform_0, window_bounds = array<i64: 8, 8, 32>}, {pipeline_mode = #tpu.pipeline_mode<synchronous>, transform_indices = @transform_1, window_bounds = array<i64: 32, 512>}, {pipeline_mode = #tpu.pipeline_mode<synchronous>, transform_indices = @transform_2, window_bounds = array<i64: 1, 512>}, {pipeline_mode = #tpu.pipeline_mode<synchronous>, transform_indices = @transform_3, window_bounds = array<i64: 512, 2>}, {pipeline_mode = #tpu.pipeline_mode<synchronous>, transform_indices = @transform_4, window_bounds = array<i64: 1, 2>}, {transform_indices = @transform_5, window_bounds = array<i64: 8, 64>}]} {
    %c0 = arith.constant 0 : index
    %c0_0 = arith.constant 0 : index
    %c0_1 = arith.constant 0 : index
    %0 = vector.load %arg1[%c0, %c0_0, %c0_1] : memref<8x8x32xf32, #tpu.memory_space<vmem>>, vector<8x8x32xf32>
    %1 = vector.shape_cast %0 : vector<8x8x32xf32> to vector<64x32xf32>
    %c0_2 = arith.constant 0 : index
    %c0_3 = arith.constant 0 : index
    %2 = vector.load %arg2[%c0_2, %c0_3] : memref<32x512xf32, #tpu.memory_space<vmem>>, vector<32x512xf32>
    %cst = arith.constant dense<0.000000e+00> : vector<64x512xf32>
    %3 = tpu.matmul %1, %2, %cst {dimension_numbers = #tpu.dot_dimension_numbers<[1], [0], [0], [1], [0, 0, 1, 1], [], []>} : vector<64x32xf32>, vector<32x512xf32>, vector<64x512xf32> -> vector<64x512xf32>
    %c0_4 = arith.constant 0 : index
    %c0_5 = arith.constant 0 : index
    %4 = vector.load %arg3[%c0_4, %c0_5] : memref<1x512xf32, #tpu.memory_space<vmem>>, vector<1x512xf32>
    %5 = vector.broadcast %4 : vector<1x512xf32> to vector<64x512xf32>
    %6 = arith.addf %3, %5 : vector<64x512xf32>
    %cst_6 = arith.constant 0.000000e+00 : f32
    %7 = vector.broadcast %cst_6 : f32 to vector<64x512xf32>
    %8 = arith.maximumf %6, %7 : vector<64x512xf32>
    %c0_7 = arith.constant 0 : index
    %c0_8 = arith.constant 0 : index
    %9 = vector.load %arg4[%c0_7, %c0_8] : memref<512x2xf32, #tpu.memory_space<vmem>>, vector<512x2xf32>
    %cst_9 = arith.constant dense<0.000000e+00> : vector<64x2xf32>
    %10 = tpu.matmul %8, %9, %cst_9 {dimension_numbers = #tpu.dot_dimension_numbers<[1], [0], [0], [1], [0, 0, 1, 1], [], []>} : vector<64x512xf32>, vector<512x2xf32>, vector<64x2xf32> -> vector<64x2xf32>
    %c0_10 = arith.constant 0 : index
    %c0_11 = arith.constant 0 : index
    %11 = vector.load %arg5[%c0_10, %c0_11] : memref<1x2xf32, #tpu.memory_space<vmem>>, vector<1x2xf32>
    %12 = vector.broadcast %11 : vector<1x2xf32> to vector<64x2xf32>
    %13 = arith.addf %10, %12 : vector<64x2xf32>
    %14 = vector.shape_cast %13 : vector<64x2xf32> to vector<8x8x2xf32>
    %cst_12 = arith.constant dense<0xFF800000> : vector<8x2xf32>
    %15 = vector.multi_reduction <maximumf>, %14, %cst_12 [1] : vector<8x8x2xf32> to vector<8x2xf32>
    %16 = vector.shape_cast %15 : vector<8x2xf32> to vector<8x1x2xf32>
    %17 = vector.broadcast %16 : vector<8x1x2xf32> to vector<8x8x2xf32>
    %18 = arith.subf %14, %17 : vector<8x8x2xf32>
    %19 = math.exp %18 : vector<8x8x2xf32>
    %cst_13 = arith.constant dense<0.000000e+00> : vector<8x2xf32>
    %20 = vector.multi_reduction <add>, %19, %cst_13 [1] : vector<8x8x2xf32> to vector<8x2xf32>
    %21 = vector.shape_cast %20 : vector<8x2xf32> to vector<8x1x2xf32>
    %22 = vector.broadcast %21 : vector<8x1x2xf32> to vector<8x8x2xf32>
    %23 = arith.divf %19, %22 : vector<8x8x2xf32>
    %cst_14 = arith.constant dense<0.000000e+00> : vector<8x2x32xf32>
    %24 = tpu.matmul %23, %0, %cst_14 {dimension_numbers = #tpu.dot_dimension_numbers<[1], [1], [2], [2], [0, 0, 0, 2, 1, 2], [0], [0]>} : vector<8x8x2xf32>, vector<8x8x32xf32>, vector<8x2x32xf32> -> vector<8x2x32xf32>
    %25 = vector.shape_cast %24 : vector<8x2x32xf32> to vector<8x64xf32>
    %c0_15 = arith.constant 0 : index
    %c0_16 = arith.constant 0 : index
    %26 = vector.load %arg6[%c0_15, %c0_16] : memref<8x64xf32, #tpu.memory_space<vmem>>, vector<8x64xf32>
    tpu.vector_store %arg6[%c0_15, %c0_16], %25 {strides = array<i32>} : memref<8x64xf32, #tpu.memory_space<vmem>>, vector<8x64xf32>,
    return
  }
  func.func @transform_0(%arg0: i32) -> (i32, i32, i32) {
    %c0_i32 = arith.constant 0 : i32
    %c0_i32_0 = arith.constant 0 : i32
    %c0_i32_1 = arith.constant 0 : i32
    return %arg0, %c0_i32, %c0_i32_0 : i32, i32, i32
  }
  func.func @transform_1(%arg0: i32) -> (i32, i32) {
    %c0_i32 = arith.constant 0 : i32
    %c0_i32_0 = arith.constant 0 : i32
    %c0_i32_1 = arith.constant 0 : i32
    return %c0_i32, %c0_i32_0 : i32, i32
  }
  func.func @transform_2(%arg0: i32) -> (i32, i32) {
    %c0_i32 = arith.constant 0 : i32
    %c0_i32_0 = arith.constant 0 : i32
    %c0_i32_1 = arith.constant 0 : i32
    return %c0_i32, %c0_i32_0 : i32, i32
  }
  func.func @transform_3(%arg0: i32) -> (i32, i32) {
    %c0_i32 = arith.constant 0 : i32
    %c0_i32_0 = arith.constant 0 : i32
    %c0_i32_1 = arith.constant 0 : i32
    return %c0_i32, %c0_i32_0 : i32, i32
  }
  func.func @transform_4(%arg0: i32) -> (i32, i32) {
    %c0_i32 = arith.constant 0 : i32
    %c0_i32_0 = arith.constant 0 : i32
    %c0_i32_1 = arith.constant 0 : i32
    return %c0_i32, %c0_i32_0 : i32, i32
  }
  func.func @transform_5(%arg0: i32) -> (i32, i32) {
    %c0_i32 = arith.constant 0 : i32
    %c0_i32_0 = arith.constant 0 : i32
    return %arg0, %c0_i32 : i32, i32
  }
}

</mosaic_0001>

<bundles_post_ra>
// kernel: tpu_custom_call.1
= control target key start
LH: loop header
LB: loop body
LE: loop exit
PB: predicated region body
PF: predicated region fallthrough
CT: control target
= control target key end

     0   :  { %10 = vsyncpa [#allocation3], 0  ;;  %s2880_s0 = inlined_call_operand.vmem [shape: f32[16,8,32], index: 0, kind: input, shape index: {}]   ;;  %s2881_s1 = inlined_call_operand.vmem [shape: f32[32,512], index: 1, kind: input, shape index: {}]   ;;  %s2882_s2 = inlined_call_operand.vmem [shape: f32[1,512], index: 2, kind: input, shape index: {}]   ;;  %s2883_s3 = inlined_call_operand.vmem [shape: f32[512,2], index: 3, kind: input, shape index: {}]   ;;  %s2884_s4 = inlined_call_operand.vmem [shape: f32[1,2], index: 4, kind: input, shape index: {}]   ;;  %s2885_s5 = inlined_call_operand.hbm [shape: f32[16,64], index: 5, kind: output, shape index: {}]  }
   0x1   :  { %12 = vsyncpa [#allocation3 + $0x1], 0  ;;  %s2341_s18 = smov 0   ;;  %s2343_s19 = smov 0  }
   0x2   :  { %s2345_s20 = smov 0   ;;  %s2347_s21 = smov 0  }
   0x3 LB: > { %s2362_s22 = sadd.s32 4294967295, %s2303_s21   ;;  %s1959_s23 = sadd.s32 4294967294, %s2303_s21   ;;  %s2303_s21 = sphi %s2347_s21, %s2891_s21   ;;  %s2299_s20 = sphi %s2345_s20, %s2890_s20   ;;  %s2295_s19 = sphi %s2343_s19, %s2889_s19   ;;  %s2291_s18 = sphi %s2341_s18, %s2888_s18  }
   0x4   : > { %s2366_s24 = sadd.s32 1, %s2303_s21   ;;  %s135_s25 = sadd.s32 1, %s2299_s20 }
   0x5   : > { %s132_s26 = ssub.s32 %s2303_s21, %s2366_s24  ;;  %p145_p0 = scmp.ne.s32.totalorder %s2299_s20, %s2295_s19 }
   0x6   : > { %p133_p1 = scmp.eq.s32.totalorder %s132_s26, 0  ;;  %p146_p2 = scmp.eq.s32.totalorder %s2362_s22, 1 }
   0x7   : > { %p151_p3 = scmp.ne.s32.totalorder %s2295_s19, %s2291_s18  ;;  %p152_p4 = scmp.eq.s32.totalorder %s1959_s23, 1 }
   0x8   : > { %s2377_s27 = scalar_select %p133_p1, %s2299_s20, %s135_s25  }
   0x9   : > { %p2379_p5 = por %p146_p2, %p145_p0  ;;  %p2383_p6 = por %p152_p4, %p151_p3 }
   0xa   : > { %p1962_p7 = scmp.ge.s32.totalorder %s2303_s21, 1  ;;  %p191_p8 = scmp.lt.s32.totalorder %s2303_s21, 3 }
   0xc   : > { %p192_p9 = pnand %p1962_p7, %p191_p8 }
   0xd   : > { %s1964_s11 = sshll.u32 (!%p192_p9), %s2362_s22, 3  ;;  %s216_s7 = sand.u32 (!%p192_p9), 1, %s2295_s19  }
   0xe   : > { %195 = sbr.rel (%p192_p9) target bundleno = 975 (0x3cf), region = 40  ;;  %p220_p10 = scmp.lt.s32.totalorder (!%p192_p9), %s1964_s11, 15 }
   0xf   : > { %s1963_s8 = sshll.u32 (!%p192_p9), %s216_s7, 3  ;;  %s1992_s9 = sshll.u32 (!%p192_p9), %s2362_s22, 7 }
  0x10   : > { %s2844_s15 = scalar_lea.hbm (!%p192_p9), %s2885_s5, %s1992_s9  ;;  %s1887_s16 = scalar_lea.sflag (!%p192_p9), [#allocation3], %s216_s7 }
  0x11   : > { %s2310_s22 = smov (!%p192_p9), [#allocation2]  }
  0x12   : > { %s2247_s23 = sshll.u32 (!%p192_p9), %s2310_s22, 4  ;;  %s2248_s23 = int_to_ptr.vmem [resolvable:$false] %s2247_s23 }
  0x13   : > { %v246_v0 = vld [vmem:[%s2881_s1 + $0x68] sm:$0xff]  ;;  %v248_v1 = vld [vmem:[%s2881_s1 + $0x78] sm:$0xff]  ;;  %v245_v2 = vld [vmem:[%s2881_s1 + $0x60] sm:$0xff]  ;;  %s2893_s11 = smov (!%p220_p10, %s1964_s11), 15  ;;  %vm271_vm0 = vcmask 261120   ;;  %v2305_v17 = vmov 0.0  }
  0x14   : > { %320 = vmatprep.subr.mxu0 %v246_v0  ;;  %433 = vmatprep.subr.mxu1 %v248_v1  ;;  %v247_v3 = vld [vmem:[%s2881_s1 + $0x70] sm:$0xff]  ;;  %v242_v4 = vld [vmem:[%s2881_s1 + $0x48] sm:$0xff]  ;;  %v244_v5 = vld [vmem:[%s2881_s1 + $0x58] sm:$0xff]  ;;  %s1965_s30 = sshll.u32 %s2893_s11, 3  ;;  %vm835_vm1 = vcmask 15360   ;;  %vm2306_vm2 = vmmov 0  }
  0x15   : > { %321 = vmatpush1.msra.mxu0 %v245_v2  ;;  %434 = vmatpush1.msra.mxu1 %v247_v3  ;;  %v241_v6 = vld [vmem:[%s2881_s1 + $0x40] sm:$0xff]  ;;  %v243_v7 = vld [vmem:[%s2881_s1 + $0x50] sm:$0xff]  ;;  %v238_v8 = vld [vmem:[%s2881_s1 + $0x28] sm:$0xff]  ;;  %s2441_s10 = scalar_lea.vmem %s2880_s0, %s1965_s30  ;;  %vm1020_vm3 = vcmask 64512   ;;  %s218_s11 = scalar_lea.vmem [#allocation2], %s1963_s8  ;;  %vm1884_vm4 = vcmask 523264  }
  0x16   : > { %322 = vmatprep.subr.mxu0 %v242_v4  ;;  %435 = vmatprep.subr.mxu1 %v244_v5  ;;  %v240_v9 = vld [vmem:[%s2881_s1 + $0x38] sm:$0xff]  ;;  %v237_v10 = vld [vmem:[%s2881_s1 + $0x20] sm:$0xff]  ;;  %v239_v11 = vld [vmem:[%s2881_s1 + $0x30] sm:$0xff]  ;;  %s1900_s12 = sshll.u32 %s218_s11, 4  ;;  %s2249_s25 = scalar_lea.vmem %s2248_s23, 256  ;;  %s1901_s12 = int_to_ptr.vmem [resolvable:$true] %s1900_s12 }
  0x17   : > { %323 = vmatpush1.msra.mxu0 %v241_v6  ;;  %436 = vmatpush1.msra.mxu1 %v243_v7  ;;  %v234_v12 = vld [vmem:[%s2881_s1 + $0x8] sm:$0xff]  ;;  %v236_v13 = vld [vmem:[%s2881_s1 + $0x18] sm:$0xff]  ;;  %v233_v14 = vld [vmem:[%s2881_s1] sm:$0xff]  ;;  %s2243_s17 = scalar_lea.vmem %s1901_s12, 128  ;;  %p2250_p0 = scmp.lt.s32.totalorder %s1901_s12, %s2248_s23 }
  0x18   : > { %324 = vmatprep.subr.mxu0 %v238_v8  ;;  %437 = vmatprep.subr.mxu1 %v240_v9  ;;  %v235_v15 = vld [vmem:[%s2881_s1 + $0x10] sm:$0xff]  ;;  %v2444_v16 = vld [vmem:[%s2441_s10] sm:$0xff]  ;;  %v585_v18 = vld [vmem:[%s2883_s3 + $0xf8] sm:$0xff]  ;;  %p2244_p11 = scmp.ne.s32.totalorder %s1901_s12, %s2243_s17  ;;  %p2251_p1 = scmp.lt.s32.totalorder %s2249_s25, %s2243_s17 }
  0x19   : > { %325 = vmatpush1.msra.mxu0 %v237_v10  ;;  %438 = vmatpush1.msra.mxu1 %v239_v11  ;;  %v617_v19 = vld [vmem:[%s2883_s3 + $0x1f8] sm:$0xff]  ;;  %v2467_v22 = vld [vmem:[%s2441_s10 + $0x8] sm:$0xff]  ;;  %v584_v23 = vld [vmem:[%s2883_s3 + $0xf0] sm:$0xff] }
  0x1a   : > { %326 = vmatprep.subr.mxu0 %v234_v12  ;;  %439 = vmatprep.subr.mxu1 %v236_v13  ;;  %v569_v20 = vld [vmem:[%s2883_s3 + $0x78] sm:$0xff]  ;;  %v616_v24 = vld [vmem:[%s2883_s3 + $0x1f0] sm:$0xff]  ;;  %v583_v28 = vld [vmem:[%s2883_s3 + $0xe8] sm:$0xff]  ;;  %p2245_p12 = pnand %p2244_p11, %p2379_p5  ;;  %p2252_p2 = por %p2251_p1, %p2250_p0 }
  0x1b   : > { %327 = vmatpush1.msra.mxu0 %v233_v14  ;;  %360 = vmatprep.mubr.f32.mxu0 %v2305_v17  ;;  %v601_v21 = vld [vmem:[%s2883_s3 + $0x178] sm:$0xff]  ;;  %v568_v25 = vld [vmem:[%s2883_s3 + $0x70] sm:$0xff]  ;;  %v615_v29 = vld [vmem:[%s2883_s3 + $0x1e8] sm:$0xff] }
  0x1c   : > { %440 = vmatpush1.msra.mxu1 %v235_v15  ;;  %473 = vmatprep.mubr.f32.mxu1 %v2305_v17  ;;  %v600_v26 = vld [vmem:[%s2883_s3 + $0x170] sm:$0xff]  ;;  %v567_v30 = vld [vmem:[%s2883_s3 + $0x68] sm:$0xff]  ;;  %v228_v32 = vld [vmem:[%s2441_s10 + $0x18] sm:$0xff]  ;;  %p2246_p13 = pneg %p2245_p12 }
  0x1d   : > { %1966 = vmatmul.mubr.msk.f32.vlgmr.msra.gmra.mxu0 %vm271_vm0, %v2444_v16  ;;  %1974 = vmatmul.mubr.msk.f32.vlgmr.msra.gmra.mxu1 %vm271_vm0, %v2444_v16  ;;  %v227_v27 = vld [vmem:[%s2441_s10 + $0x10] sm:$0xff]  ;;  %v599_v31 = vld [vmem:[%s2883_s3 + $0x168] sm:$0xff]  ;;  %v582_v33 = vld [vmem:[%s2883_s3 + $0xe0] sm:$0xff] }
  0x1e   : > { %366 = vmatprep.mubr.f32.mxu0 %v2305_v17  ;;  %479 = vmatprep.mubr.f32.mxu1 %v2305_v17  ;;  %v614_v34 = vld [vmem:[%s2883_s3 + $0x1e0] sm:$0xff]  ;;  %v581_v38 = vld [vmem:[%s2883_s3 + $0xd8] sm:$0xff]  ;;  %v230_v42 = vld [vmem:[%s2441_s10 + $0x28] sm:$0xff]  ;;  %p2253_p3 = pnand %p2252_p2, %p2246_p13 }
  0x1f   : > { %1995 = vmatprep.subr.mxu0 %v585_v18  ;;  %2051 = vmatprep.subr.mxu1 %v617_v19  ;;  %v566_v35 = vld [vmem:[%s2883_s3 + $0x60] sm:$0xff]  ;;  %v613_v39 = vld [vmem:[%s2883_s3 + $0x1d8] sm:$0xff]  ;;  %v580_v43 = vld [vmem:[%s2883_s3 + $0xd0] sm:$0xff] }
  0x20   : > { %1996 = vmatpush3.msra.mxu0 %v569_v20  ;;  %2052 = vmatpush3.msra.mxu1 %v601_v21  ;;  %v598_v36 = vld [vmem:[%s2883_s3 + $0x160] sm:$0xff]  ;;  %v565_v40 = vld [vmem:[%s2883_s3 + $0x58] sm:$0xff]  ;;  %v612_v44 = vld [vmem:[%s2883_s3 + $0x1d0] sm:$0xff] }
  0x21   : > { %1967 = vmatmul.mubr.msk.f32.gmra.mxu0 %vm271_vm0, %v2467_v22  ;;  %1975 = vmatmul.mubr.msk.f32.gmra.mxu1 %vm271_vm0, %v2467_v22  ;;  %v229_v37 = vld [vmem:[%s2441_s10 + $0x20] sm:$0xff]  ;;  %v597_v41 = vld [vmem:[%s2883_s3 + $0x158] sm:$0xff]  ;;  %v564_v45 = vld [vmem:[%s2883_s3 + $0x50] sm:$0xff] }
  0x22   : > { %372 = vmatprep.mubr.f32.mxu0 %v2305_v17  ;;  %485 = vmatprep.mubr.f32.mxu1 %v2305_v17  ;;  %v596_v46 = vld [vmem:[%s2883_s3 + $0x150] sm:$0xff]  ;;  %v579_v48 = vld [vmem:[%s2883_s3 + $0xc8] sm:$0xff]  ;;  %v2577_v52 = vld [vmem:[%s2441_s10 + $0x38] sm:$0xff] }
  0x23   : > { %1997 = vmatprep.subr.mxu0 %v584_v23  ;;  %2053 = vmatprep.subr.mxu1 %v616_v24  ;;  %v2556_v47 = vld [vmem:[%s2441_s10 + $0x30] sm:$0xff]  ;;  %v611_v49 = vld [vmem:[%s2883_s3 + $0x1c8] sm:$0xff]  ;;  %v578_v53 = vld [vmem:[%s2883_s3 + $0xc0] sm:$0xff] }
  0x24   : > { %1998 = vmatpush3.msra.mxu0 %v568_v25  ;;  %2054 = vmatpush3.msra.mxu1 %v600_v26  ;;  %v563_v50 = vld [vmem:[%s2883_s3 + $0x48] sm:$0xff]  ;;  %v610_v54 = vld [vmem:[%s2883_s3 + $0x1c0] sm:$0xff]  ;;  %v577_v57 = vld [vmem:[%s2883_s3 + $0xb8] sm:$0xff] }
  0x25   : > { %1968 = vmatmul.mubr.msk.f32.gmra.mxu0 %vm271_vm0, %v227_v27  ;;  %1976 = vmatmul.mubr.msk.f32.gmra.mxu1 %vm271_vm0, %v227_v27  ;;  %v595_v51 = vld [vmem:[%s2883_s3 + $0x148] sm:$0xff]  ;;  %v562_v55 = vld [vmem:[%s2883_s3 + $0x40] sm:$0xff]  ;;  %v609_v58 = vld [vmem:[%s2883_s3 + $0x1b8] sm:$0xff] }
  0x26   : > { %378 = vmatprep.mubr.f32.mxu0 %v2305_v17  ;;  %491 = vmatprep.mubr.f32.mxu1 %v2305_v17  ;;  %v594_v56 = vld [vmem:[%s2883_s3 + $0x140] sm:$0xff]  ;;  %v561_v59 = vld [vmem:[%s2883_s3 + $0x38] sm:$0xff]  ;;  %v576_v61 = vld [vmem:[%s2883_s3 + $0xb0] sm:$0xff] }
  0x27   : > { %1999 = vmatprep.subr.mxu0 %v583_v28  ;;  %2055 = vmatprep.subr.mxu1 %v615_v29  ;;  %v593_v60 = vld [vmem:[%s2883_s3 + $0x138] sm:$0xff]  ;;  %v608_v62 = vld [vmem:[%s2883_s3 + $0x1b0] sm:$0xff]  ;;  %v575_v1 = vld [vmem:[%s2883_s3 + $0xa8] sm:$0xff]  ;;  %v251_v28 = vlaneseq }
  0x28   : > { %2000 = vmatpush3.msra.mxu0 %v567_v30  ;;  %2056 = vmatpush3.msra.mxu1 %v599_v31  ;;  %v560_v63 = vld [vmem:[%s2883_s3 + $0x30] sm:$0xff]  ;;  %v607_v2 = vld [vmem:[%s2883_s3 + $0x1a8] sm:$0xff]  ;;  %v574_v5 = vld [vmem:[%s2883_s3 + $0xa0] sm:$0xff] }
  0x29   : > { %1969 = vmatmul.mubr.msk.f32.gmra.mxu0 %vm271_vm0, %v228_v32  ;;  %1977 = vmatmul.mubr.msk.f32.gmra.mxu1 %vm271_vm0, %v228_v32  ;;  %v592_v0 = vld [vmem:[%s2883_s3 + $0x130] sm:$0xff]  ;;  %v559_v3 = vld [vmem:[%s2883_s3 + $0x28] sm:$0xff]  ;;  %v606_v6 = vld [vmem:[%s2883_s3 + $0x1a0] sm:$0xff]  ;;  %v2693_v29 = vshrl.u32 %v251_v28, 7 }
  0x2a   : > { %384 = vmatprep.mubr.f32.mxu0 %v2305_v17  ;;  %497 = vmatprep.mubr.f32.mxu1 %v2305_v17  ;;  %v591_v4 = vld [vmem:[%s2883_s3 + $0x128] sm:$0xff]  ;;  %v558_v7 = vld [vmem:[%s2883_s3 + $0x20] sm:$0xff]  ;;  %v573_v9 = vld [vmem:[%s2883_s3 + $0x98] sm:$0xff] }
  0x2b   : > { %2001 = vmatprep.subr.mxu0 %v582_v33  ;;  %2057 = vmatprep.subr.mxu1 %v614_v34  ;;  %v590_v8 = vld [vmem:[%s2883_s3 + $0x120] sm:$0xff]  ;;  %v605_v10 = vld [vmem:[%s2883_s3 + $0x198] sm:$0xff]  ;;  %v572_v13 = vld [vmem:[%s2883_s3 + $0x90] sm:$0xff]  ;;  %v261_v30 = vsub.s32 2, %v2693_v29  ;;  %v253_v31 = vsub.s32 0, %v2693_v29  ;;  %v257_v33 = vsub.s32 1, %v2693_v29 }
  0x2c   : > { %2002 = vmatpush3.msra.mxu0 %v566_v35  ;;  %2058 = vmatpush3.msra.mxu1 %v598_v36  ;;  %v557_v11 = vld [vmem:[%s2883_s3 + $0x18] sm:$0xff]  ;;  %v604_v14 = vld [vmem:[%s2883_s3 + $0x190] sm:$0xff]  ;;  %v571_v19 = vld [vmem:[%s2883_s3 + $0x88] sm:$0xff]  ;;  %v265_v34 = vsub.s32 3, %v2693_v29 }
  0x2d   : > { %1970 = vmatmul.mubr.msk.f32.gmra.mxu0 %vm271_vm0, %v229_v37  ;;  %1978 = vmatmul.mubr.msk.f32.gmra.mxu1 %vm271_vm0, %v229_v37  ;;  %v589_v12 = vld [vmem:[%s2883_s3 + $0x118] sm:$0xff]  ;;  %v556_v15 = vld [vmem:[%s2883_s3 + $0x10] sm:$0xff]  ;;  %v603_v20 = vld [vmem:[%s2883_s3 + $0x188] sm:$0xff] }
  0x2e   : > { %390 = vmatprep.mubr.f32.mxu0 %v2305_v17  ;;  %503 = vmatprep.mubr.f32.mxu1 %v2305_v17  ;;  %v588_v18 = vld [vmem:[%s2883_s3 + $0x110] sm:$0xff]  ;;  %v555_v21 = vld [vmem:[%s2883_s3 + $0x8] sm:$0xff]  ;;  %v570_v24 = vld [vmem:[%s2883_s3 + $0x80] sm:$0xff] }
  0x2f   : > { %2003 = vmatprep.subr.mxu0 %v581_v38  ;;  %2059 = vmatprep.subr.mxu1 %v613_v39  ;;  %v587_v23 = vld [vmem:[%s2883_s3 + $0x108] sm:$0xff]  ;;  %v602_v25 = vld [vmem:[%s2883_s3 + $0x180] sm:$0xff] }
  0x30   : > { %2004 = vmatpush3.msra.mxu0 %v565_v40  ;;  %2060 = vmatpush3.msra.mxu1 %v597_v41  ;;  %v554_v26 = vld [vmem:[%s2883_s3] sm:$0xff] }
  0x31   : > { %1971 = vmatmul.mubr.msk.f32.gmra.mxu0 %vm271_vm0, %v230_v42  ;;  %1979 = vmatmul.mubr.msk.f32.gmra.mxu1 %vm271_vm0, %v230_v42  ;;  %v586_v27 = vld [vmem:[%s2883_s3 + $0x100] sm:$0xff] }
  0x32   : > { %396 = vmatprep.mubr.f32.mxu0 %v2305_v17  ;;  %509 = vmatprep.mubr.f32.mxu1 %v2305_v17  ;;  %v249_v32 = vld [vmem:[%s2882_s2] sm:$0xf] }
  0x33   : > { %2005 = vmatprep.subr.mxu0 %v580_v43  ;;  %2061 = vmatprep.subr.mxu1 %v612_v44  ;;  %v2702_v35 = vrot.slane %v249_v32, %v261_v30  ;;  %v2704_v36 = vrot.slane %v249_v32, %v253_v31  ;;  %v2706_v37 = vrot.slane %v249_v32, %v257_v33 }
  0x34   : > { %2006 = vmatpush3.msra.mxu0 %v564_v45  ;;  %2062 = vmatpush3.msra.mxu1 %v596_v46  ;;  %v2708_v38 = vrot.slane %v249_v32, %v265_v34 }
  0x35   : > { %1972 = vmatmul.mubr.msk.f32.gmra.mxu0 %vm271_vm0, %v2556_v47  ;;  %1980 = vmatmul.mubr.msk.f32.gmra.mxu1 %vm271_vm0, %v2556_v47 }
  0x36   : > { %402 = vmatprep.mubr.f32.mxu0 %v2305_v17  ;;  %515 = vmatprep.mubr.f32.mxu1 %v2305_v17 }
  0x37   : > { %2007 = vmatprep.subr.mxu0 %v579_v48  ;;  %2063 = vmatprep.subr.mxu1 %v611_v49 }
  0x38   : > { %2008 = vmatpush3.msra.mxu0 %v563_v50  ;;  %2064 = vmatpush3.msra.mxu1 %v595_v51 }
  0x39   : > { %1973 = vmatmul.mubr.msk.f32.gmra.mxu0 %vm271_vm0, %v2577_v52  ;;  %1981 = vmatmul.mubr.msk.f32.gmra.mxu1 %vm271_vm0, %v2577_v52 }
  0x3a   : > { %2009 = vmatprep.subr.mxu0 %v578_v53  ;;  %2065 = vmatprep.subr.mxu1 %v610_v54 }
  0x3b   : > { %2010 = vmatpush3.msra.mxu0 %v562_v55  ;;  %2066 = vmatpush3.msra.mxu1 %v594_v56 }
  0x3c   : > { %2011 = vmatprep.subr.mxu0 %v577_v57  ;;  %2067 = vmatprep.subr.mxu1 %v609_v58 }
  0x3d   : > { %2012 = vmatpush3.msra.mxu0 %v561_v59  ;;  %2068 = vmatpush3.msra.mxu1 %v593_v60 }
  0x3e   : > { %2013 = vmatprep.subr.mxu0 %v576_v61  ;;  %2069 = vmatprep.subr.mxu1 %v608_v62 }
  0x3f   : > { %2014 = vmatpush3.msra.mxu0 %v560_v63  ;;  %2070 = vmatpush3.msra.mxu1 %v592_v0 }
  0x40   : > { %2015 = vmatprep.subr.mxu0 %v575_v1  ;;  %2071 = vmatprep.subr.mxu1 %v607_v2 }
  0x41   : > { %2016 = vmatpush3.msra.mxu0 %v559_v3  ;;  %2072 = vmatpush3.msra.mxu1 %v591_v4 }
  0x42   : > { %2017 = vmatprep.subr.mxu0 %v574_v5  ;;  %2073 = vmatprep.subr.mxu1 %v606_v6 }
  0x43   : > { %2018 = vmatpush3.msra.mxu0 %v558_v7  ;;  %2074 = vmatpush3.msra.mxu1 %v590_v8 }
  0x44   : > { %2019 = vmatprep.subr.mxu0 %v573_v9  ;;  %2075 = vmatprep.subr.mxu1 %v605_v10 }
  0x45   : > { %2020 = vmatpush3.msra.mxu0 %v557_v11  ;;  %2076 = vmatpush3.msra.mxu1 %v589_v12 }
  0x46   : > { %2021 = vmatprep.subr.mxu0 %v572_v13  ;;  %2077 = vmatprep.subr.mxu1 %v604_v14 }
  0x47   : > { %2022 = vmatpush3.msra.mxu0 %v556_v15  ;;  %2078 = vmatpush3.msra.mxu1 %v588_v18 }
  0x48   : > { %2023 = vmatprep.subr.mxu0 %v571_v19  ;;  %2079 = vmatprep.subr.mxu1 %v603_v20 }
  0x49   : > { %2024 = vmatpush3.msra.mxu0 %v555_v21  ;;  %2080 = vmatpush3.msra.mxu1 %v587_v23 }
  0x4a   : > { %2025 = vmatprep.subr.mxu0 %v570_v24  ;;  %2081 = vmatprep.subr.mxu1 %v602_v25 }
  0x4b   : > { %2026 = vmatpush3.msra.mxu0 %v554_v26  ;;  %2082 = vmatpush3.msra.mxu1 %v586_v27 }
  0x4c   : > { %2123 = vmatprep.subr.mxu0 %v2305_v17  ;;  %2128 = vmatprep.subr.mxu1 %v2305_v17 }
  0xdd   : > { %v362_v39 = vpop.f32.mrf.mxu0  ;;  %v475_v40 = vpop.f32.mrf.mxu1 }
  0xde   : > { %v476_v41 = vadd.f32 %v475_v40, %v2702_v35  ;;  %v363_v42 = vadd.f32 %v362_v39, %v2704_v36 }
  0xdf   : > { %v364_v43 = vpop.f32.mrf.mxu0  ;;  %v477_v44 = vpop.f32.mrf.mxu1 }
  0xe0   : > { %v365_v45 = vadd.f32 %v364_v43, %v2706_v37  ;;  %v478_v46 = vadd.f32 %v477_v44, %v2708_v38  ;;  %v524_v48 = vmax.f32 %v476_v41, 0.0  ;;  %v522_v55 = vmax.f32 %v363_v42, 0.0 }
  0xe1   : > { %v368_v49 = vpop.f32.mrf.mxu0  ;;  %v481_v50 = vpop.f32.mrf.mxu1 }
  0xe2   : > { %v523_v51 = vmax.f32 %v365_v45, 0.0  ;;  %v525_v53 = vmax.f32 %v478_v46, 0.0  ;;  %v482_v54 = vadd.f32 %v481_v50, %v2702_v35  ;;  %v369_v56 = vadd.f32 %v368_v49, %v2704_v36 }
  0xe3   : > { %v370_v57 = vpop.f32.mrf.mxu0  ;;  %v483_v58 = vpop.f32.mrf.mxu1 }
  0xe4   : > { %v371_v59 = vadd.f32 %v370_v57, %v2706_v37  ;;  %v484_v60 = vadd.f32 %v483_v58, %v2708_v38  ;;  %689 = vmatprep.mubr.f32.mxu0 %v523_v51  ;;  %794 = vmatprep.mubr.f32.mxu1 %v525_v53  ;;  %v528_v61 = vmax.f32 %v482_v54, 0.0  ;;  %v526_v3 = vmax.f32 %v369_v56, 0.0 }
  0xe5   : > { %v374_v62 = vpop.f32.mrf.mxu0  ;;  %v487_v63 = vpop.f32.mrf.mxu1  ;;  %690 = vmatmul.mubr.f32.vlgmr.msra.gmra.mxu0 %v522_v55  ;;  %795 = vmatmul.mubr.f32.vlgmr.msra.gmra.mxu1 %v524_v48 }
  0xe6   : > { %v527_v0 = vmax.f32 %v371_v59, 0.0  ;;  %v529_v1 = vmax.f32 %v484_v60, 0.0  ;;  %v488_v2 = vadd.f32 %v487_v63, %v2702_v35  ;;  %2124 = vmatpush3.msra.mxu0 %v2444_v16  ;;  %2129 = vmatpush3.msra.mxu1 %v2467_v22  ;;  %v375_v4 = vadd.f32 %v374_v62, %v2704_v36 }
  0xe7   : > { %v376_v5 = vpop.f32.mrf.mxu0  ;;  %v489_v6 = vpop.f32.mrf.mxu1  ;;  %2133 = vmatprep.subr.mxu0 %v2305_v17  ;;  %2138 = vmatprep.subr.mxu1 %v2305_v17 }
  0xe8   : > { %v377_v7 = vadd.f32 %v376_v5, %v2706_v37  ;;  %v490_v8 = vadd.f32 %v489_v6, %v2708_v38  ;;  %694 = vmatprep.mubr.f32.mxu0 %v527_v0  ;;  %799 = vmatprep.mubr.f32.mxu1 %v529_v1  ;;  %v532_v9 = vmax.f32 %v488_v2, 0.0  ;;  %v530_v13 = vmax.f32 %v375_v4, 0.0 }
  0xe9   : > { %v380_v10 = vpop.f32.mrf.mxu0  ;;  %v493_v16 = vpop.f32.mrf.mxu1  ;;  %695 = vmatmul.mubr.f32.gmra.mxu0 %v526_v3  ;;  %800 = vmatmul.mubr.f32.gmra.mxu1 %v528_v61 }
  0xea   : > { %v531_v22 = vmax.f32 %v377_v7, 0.0  ;;  %v533_v11 = vmax.f32 %v490_v8, 0.0  ;;  %v494_v12 = vadd.f32 %v493_v16, %v2702_v35  ;;  %v381_v14 = vadd.f32 %v380_v10, %v2704_v36 }
  0xeb   : > { %v382_v15 = vpop.f32.mrf.mxu0  ;;  %v495_v18 = vpop.f32.mrf.mxu1 }
  0xec   : > { %v383_v19 = vadd.f32 %v382_v15, %v2706_v37  ;;  %v496_v20 = vadd.f32 %v495_v18, %v2708_v38  ;;  %699 = vmatprep.mubr.f32.mxu0 %v531_v22  ;;  %804 = vmatprep.mubr.f32.mxu1 %v533_v11  ;;  %v536_v21 = vmax.f32 %v494_v12, 0.0  ;;  %v534_v28 = vmax.f32 %v381_v14, 0.0 }
  0xed   : > { %v386_v23 = vpop.f32.mrf.mxu0  ;;  %v499_v24 = vpop.f32.mrf.mxu1  ;;  %700 = vmatmul.mubr.f32.gmra.mxu0 %v530_v13  ;;  %805 = vmatmul.mubr.f32.gmra.mxu1 %v532_v9 }
  0xee   : > { %v535_v25 = vmax.f32 %v383_v19, 0.0  ;;  %v537_v26 = vmax.f32 %v496_v20, 0.0  ;;  %v500_v27 = vadd.f32 %v499_v24, %v2702_v35  ;;  %v387_v30 = vadd.f32 %v386_v23, %v2704_v36 }
  0xef   : > { %v388_v31 = vpop.f32.mrf.mxu0  ;;  %v501_v32 = vpop.f32.mrf.mxu1 }
  0xf0   : > { %v389_v33 = vadd.f32 %v388_v31, %v2706_v37  ;;  %v502_v34 = vadd.f32 %v501_v32, %v2708_v38  ;;  %704 = vmatprep.mubr.f32.mxu0 %v535_v25  ;;  %809 = vmatprep.mubr.f32.mxu1 %v537_v26  ;;  %v540_v39 = vmax.f32 %v500_v27, 0.0  ;;  %v538_v45 = vmax.f32 %v387_v30, 0.0 }
  0xf1   : > { %v392_v40 = vpop.f32.mrf.mxu0  ;;  %v505_v41 = vpop.f32.mrf.mxu1  ;;  %705 = vmatmul.mubr.f32.gmra.mxu0 %v534_v28  ;;  %810 = vmatmul.mubr.f32.gmra.mxu1 %v536_v21 }
  0xf2   : > { %v539_v42 = vmax.f32 %v389_v33, 0.0  ;;  %v541_v43 = vmax.f32 %v502_v34, 0.0  ;;  %v506_v44 = vadd.f32 %v505_v41, %v2702_v35  ;;  %v393_v46 = vadd.f32 %v392_v40, %v2704_v36 }
  0xf3   : > { %v394_v48 = vpop.f32.mrf.mxu0  ;;  %v507_v49 = vpop.f32.mrf.mxu1 }
  0xf4   : > { %v395_v50 = vadd.f32 %v394_v48, %v2706_v37  ;;  %v508_v51 = vadd.f32 %v507_v49, %v2708_v38  ;;  %709 = vmatprep.mubr.f32.mxu0 %v539_v42  ;;  %814 = vmatprep.mubr.f32.mxu1 %v541_v43  ;;  %v544_v53 = vmax.f32 %v506_v44, 0.0  ;;  %v542_v59 = vmax.f32 %v393_v46, 0.0 }
  0xf5   : > { %v398_v54 = vpop.f32.mrf.mxu0  ;;  %v511_v55 = vpop.f32.mrf.mxu1  ;;  %710 = vmatmul.mubr.f32.gmra.mxu0 %v538_v45  ;;  %815 = vmatmul.mubr.f32.gmra.mxu1 %v540_v39 }
  0xf6   : > { %v543_v56 = vmax.f32 %v395_v50, 0.0  ;;  %v545_v57 = vmax.f32 %v508_v51, 0.0  ;;  %v512_v58 = vadd.f32 %v511_v55, %v2702_v35  ;;  %v399_v60 = vadd.f32 %v398_v54, %v2704_v36 }
  0xf7   : > { %v400_v61 = vpop.f32.mrf.mxu0  ;;  %v513_v62 = vpop.f32.mrf.mxu1 }
  0xf8   : > { %v401_v63 = vadd.f32 %v400_v61, %v2706_v37  ;;  %v514_v0 = vadd.f32 %v513_v62, %v2708_v38  ;;  %714 = vmatprep.mubr.f32.mxu0 %v543_v56  ;;  %819 = vmatprep.mubr.f32.mxu1 %v545_v57  ;;  %v548_v1 = vmax.f32 %v512_v58, 0.0  ;;  %v546_v7 = vmax.f32 %v399_v60, 0.0 }
  0xf9   : > { %v404_v2 = vpop.f32.mrf.mxu0  ;;  %v517_v3 = vpop.f32.mrf.mxu1  ;;  %715 = vmatmul.mubr.f32.gmra.mxu0 %v542_v59  ;;  %820 = vmatmul.mubr.f32.gmra.mxu1 %v544_v53 }
  0xfa   : > { %v547_v4 = vmax.f32 %v401_v63, 0.0  ;;  %v549_v5 = vmax.f32 %v514_v0, 0.0  ;;  %v518_v6 = vadd.f32 %v517_v3, %v2702_v35  ;;  %v405_v8 = vadd.f32 %v404_v2, %v2704_v36 }
  0xfb   : > { %v406_v9 = vpop.f32.mrf.mxu0  ;;  %v519_v10 = vpop.f32.mrf.mxu1 }
  0xfc   : > { %v407_v16 = vadd.f32 %v406_v9, %v2706_v37  ;;  %v520_v22 = vadd.f32 %v519_v10, %v2708_v38  ;;  %719 = vmatprep.mubr.f32.mxu0 %v547_v4  ;;  %824 = vmatprep.mubr.f32.mxu1 %v549_v5  ;;  %v552_v11 = vmax.f32 %v518_v6, 0.0  ;;  %v550_v14 = vmax.f32 %v405_v8, 0.0  ;;  %v2749_v37 = vld [vmem:[%s2884_s4] ss:$0 sm:$0xff] }
  0xfd   : > { %720 = vmatmul.mubr.f32.gmra.mxu0 %v546_v7  ;;  %825 = vmatmul.mubr.f32.gmra.mxu1 %v548_v1 }
  0xfe   : > { %v551_v12 = vmax.f32 %v407_v16, 0.0  ;;  %v553_v13 = vmax.f32 %v520_v22, 0.0 }
 0x100   : > { %724 = vmatprep.mubr.f32.mxu0 %v551_v12  ;;  %829 = vmatprep.mubr.f32.mxu1 %v553_v13 }
 0x101   : > { %725 = vmatmul.mubr.f32.gmra.mxu0 %v550_v14  ;;  %830 = vmatmul.mubr.f32.gmra.mxu1 %v552_v11 }
 0x102   : > { %2125 = vmatprep.mubr.msk.f32.mxu0 %vm2306_vm2, %v2305_v17  ;;  %2130 = vmatprep.mubr.msk.f32.mxu1 %vm2306_vm2, %v2305_v17 }
 0x1a5   : > { %v2027_v35 = vpop.f32.mrf.mxu0  ;;  %v2083_v36 = vpop.f32.mrf.mxu1 }
 0x1a7   : > { %v2028_v38 = vpop.f32.mrf.mxu0  ;;  %v2084_v15 = vpop.f32.mrf.mxu1 }
 0x1a8   : > { %v2029_v18 = vadd.f32 %v2028_v38, %v2027_v35  ;;  %v2085_v23 = vadd.f32 %v2084_v15, %v2083_v36 }
 0x1a9   : > { %v2030_v19 = vpop.f32.mrf.mxu0  ;;  %v2086_v20 = vpop.f32.mrf.mxu1 }
 0x1aa   : > { %v692_v21 = vadd.f32 %v2029_v18, %v2749_v37 }
 0x1ab   : > { %v2031_v24 = vpop.f32.mrf.mxu0  ;;  %v2087_v25 = vpop.f32.mrf.mxu1 }
 0x1ac   : > { %v797_v26 = vadd.f32 %v2085_v23, %v692_v21  ;;  %v2032_v27 = vadd.f32 %v2031_v24, %v2030_v19  ;;  %v2088_v33 = vadd.f32 %v2087_v25, %v2086_v20 }
 0x1ad   : > { %v2033_v28 = vpop.f32.mrf.mxu0  ;;  %v2089_v30 = vpop.f32.mrf.mxu1 }
 0x1ae   : > { %v836_v31 = vsel %vm835_vm1, %v797_v26, -inf  ;;  %v697_v32 = vadd.f32 %v2032_v27, %v2749_v37 }
 0x1af   : > { %v837_v34 = vrot.slane %v836_v31, 4  ;;  %v2034_v39 = vpop.f32.mrf.mxu0  ;;  %v2090_v40 = vpop.f32.mrf.mxu1 }
 0x1b0   : > { %v802_v41 = vadd.f32 %v2088_v33, %v697_v32  ;;  %v2035_v42 = vadd.f32 %v2034_v39, %v2033_v28  ;;  %v2091_v49 = vadd.f32 %v2090_v40, %v2089_v30 }
 0x1b1   : > { %v838_v43 = vmax.f32 %v836_v31, %v837_v34  ;;  %v2036_v44 = vpop.f32.mrf.mxu0  ;;  %v2092_v45 = vpop.f32.mrf.mxu1 }
 0x1b2   : > { %v843_v46 = vsel %vm835_vm1, %v802_v41, -inf  ;;  %v702_v48 = vadd.f32 %v2035_v42, %v2749_v37 }
 0x1b3   : > { %v839_v50 = vrot.slane %v838_v43, 2  ;;  %v844_v51 = vrot.slane %v843_v46, 4  ;;  %v2037_v53 = vpop.f32.mrf.mxu0  ;;  %v2093_v54 = vpop.f32.mrf.mxu1 }
 0x1b4   : > { %v2756_v55 = vadd.f32 %v2091_v49, %v702_v48  ;;  %v2038_v56 = vadd.f32 %v2037_v53, %v2036_v44  ;;  %v2094_v63 = vadd.f32 %v2093_v54, %v2092_v45 }
 0x1b5   : > { %v840_v57 = vmax.f32 %v838_v43, %v839_v50  ;;  %v845_v58 = vmax.f32 %v843_v46, %v844_v51  ;;  %v2039_v59 = vpop.f32.mrf.mxu0  ;;  %v2095_v60 = vpop.f32.mrf.mxu1 }
 0x1b6   : > { %v850_v61 = vsel %vm835_vm1, %v2756_v55, -inf  ;;  %v707_v62 = vadd.f32 %v2038_v56, %v2749_v37 }
 0x1b7   : > { %v841_v0 = vrot.slane %v840_v57, 1  ;;  %v846_v1 = vrot.slane %v845_v58, 2  ;;  %v851_v2 = vrot.slane %v850_v61, 4  ;;  %v2040_v3 = vpop.f32.mrf.mxu0  ;;  %v2096_v4 = vpop.f32.mrf.mxu1 }
 0x1b8   : > { %v2761_v5 = vadd.f32 %v2094_v63, %v707_v62  ;;  %v2041_v6 = vadd.f32 %v2040_v3, %v2039_v59  ;;  %v2097_v12 = vadd.f32 %v2096_v4, %v2095_v60 }
 0x1b9   : > { %v842_v7 = vmax.f32 %v840_v57, %v841_v0  ;;  %v847_v8 = vmax.f32 %v845_v58, %v846_v1  ;;  %v852_v9 = vmax.f32 %v850_v61, %v851_v2  ;;  %v2042_v10 = vpop.f32.mrf.mxu0  ;;  %v2098_v16 = vpop.f32.mrf.mxu1 }
 0x1ba   : > { %v857_v22 = vsel %vm835_vm1, %v2761_v5, -inf  ;;  %v712_v11 = vadd.f32 %v2041_v6, %v2749_v37 }
 0x1bb   : > { %v892_v13 = vsub.f32 %v797_v26, %v842_v7  ;;  %v848_v14 = vrot.slane %v847_v8, 1  ;;  %v853_v35 = vrot.slane %v852_v9, 2  ;;  %v858_v36 = vrot.slane %v857_v22, 4  ;;  %v2043_v38 = vpop.f32.mrf.mxu0  ;;  %v2099_v15 = vpop.f32.mrf.mxu1 }
 0x1bc   : > { %v2766_v18 = vadd.f32 %v2097_v12, %v712_v11  ;;  %v2044_v19 = vadd.f32 %v2043_v38, %v2042_v10  ;;  %v2100_v26 = vadd.f32 %v2099_v15, %v2098_v16 }
 0x1bd   : > { %v900_v20 = vmul.f32 1.442695, %v892_v13  ;;  %v849_v21 = vmax.f32 %v847_v8, %v848_v14  ;;  %v854_v23 = vmax.f32 %v852_v9, %v853_v35  ;;  %v859_v24 = vmax.f32 %v857_v22, %v858_v36  ;;  %v2045_v25 = vpop.f32.mrf.mxu0  ;;  %v2101_v27 = vpop.f32.mrf.mxu1 }
 0x1be   : > { %v864_v28 = vsel %vm835_vm1, %v2766_v18, -inf  ;;  %v717_v30 = vadd.f32 %v2044_v19, %v2749_v37 }
 0x1bf   : > { %2207 = vpow2.f32 %v900_v20  ;;  %v893_v31 = vsub.f32 %v802_v41, %v849_v21  ;;  %v855_v32 = vrot.slane %v854_v23, 1  ;;  %v860_v33 = vrot.slane %v859_v24, 2  ;;  %v2046_v34 = vpop.f32.mrf.mxu0  ;;  %v2102_v39 = vpop.f32.mrf.mxu1 }
 0x1c0   : > { %v865_v40 = vrot.slane %v864_v28, 4  ;;  %v822_v42 = vadd.f32 %v2100_v26, %v717_v30  ;;  %v2047_v43 = vadd.f32 %v2046_v34, %v2045_v25  ;;  %v2103_v54 = vadd.f32 %v2102_v39, %v2101_v27 }
 0x1c1   : > { %v902_v44 = vmul.f32 1.442695, %v893_v31  ;;  %v856_v45 = vmax.f32 %v854_v23, %v855_v32  ;;  %v861_v46 = vmax.f32 %v859_v24, %v860_v33  ;;  %v2048_v48 = vpop.f32.mrf.mxu0  ;;  %v2104_v49 = vpop.f32.mrf.mxu1 }
 0x1c2   : > { %v866_v50 = vmax.f32 %v864_v28, %v865_v40  ;;  %v871_v51 = vsel %vm835_vm1, %v822_v42, -inf  ;;  %v722_v53 = vadd.f32 %v2047_v43, %v2749_v37 }
 0x1c3   : > { %2209 = vpow2.f32 %v902_v44  ;;  %v894_v41 = vsub.f32 %v2756_v55, %v856_v45  ;;  %v862_v56 = vrot.slane %v861_v46, 1  ;;  %v872_v57 = vrot.slane %v871_v51, 4  ;;  %v2049_v58 = vpop.f32.mrf.mxu0  ;;  %v2105_v59 = vpop.f32.mrf.mxu1 }
 0x1c4   : > { %v867_v60 = vrot.slane %v866_v50, 2  ;;  %v827_v61 = vadd.f32 %v2103_v54, %v722_v53  ;;  %v2050_v62 = vadd.f32 %v2049_v58, %v2048_v48  ;;  %v2106_v6 = vadd.f32 %v2105_v59, %v2104_v49 }
 0x1c5   : > { %v904_v63 = vmul.f32 1.442695, %v894_v41  ;;  %v863_v0 = vmax.f32 %v861_v46, %v862_v56  ;;  %v873_v1 = vmax.f32 %v871_v51, %v872_v57 }
 0x1c6   : > { %v868_v2 = vmax.f32 %v866_v50, %v867_v60  ;;  %v878_v3 = vsel %vm835_vm1, %v827_v61, -inf  ;;  %v727_v4 = vadd.f32 %v2050_v62, %v2749_v37 }
 0x1c7   : > { %2211 = vpow2.f32 %v904_v63  ;;  %v895_v7 = vsub.f32 %v2761_v5, %v863_v0  ;;  %v874_v55 = vrot.slane %v873_v1, 2  ;;  %v879_v8 = vrot.slane %v878_v3, 4 }
 0x1c8   : > { %v869_v9 = vrot.slane %v868_v2, 1  ;;  %v832_v10 = vadd.f32 %v2106_v6, %v727_v4 }
 0x1c9   : > { %v906_v16 = vmul.f32 1.442695, %v895_v7  ;;  %v875_v22 = vmax.f32 %v873_v1, %v874_v55  ;;  %v880_v11 = vmax.f32 %v878_v3, %v879_v8 }
 0x1ca   : > { %v870_v12 = vmax.f32 %v868_v2, %v869_v9  ;;  %v885_v13 = vsel %vm835_vm1, %v832_v10, -inf }
 0x1cb   : > { %2213 = vpow2.f32 %v906_v16  ;;  %v876_v14 = vrot.slane %v875_v22, 1  ;;  %v881_v35 = vrot.slane %v880_v11, 2  ;;  %v886_v36 = vrot.slane %v885_v13, 4 }
 0x1cc   : > { %v2778_v38 = vpop.eup %2207  ;;  %v896_v37 = vsub.f32 %v2766_v18, %v870_v12 }
 0x1cd   : > { %v877_v15 = vmax.f32 %v875_v22, %v876_v14  ;;  %v882_v5 = vmax.f32 %v880_v11, %v881_v35  ;;  %v887_v19 = vmax.f32 %v885_v13, %v886_v36  ;;  %v916_v20 = vsel %vm835_vm1, %v2778_v38, 0.0 }
 0x1ce   : > { %v908_v21 = vmul.f32 1.442695, %v896_v37  ;;  %v917_v23 = vrot.slane %v916_v20, 4 }
 0x1cf   : > { %v897_v24 = vsub.f32 %v822_v42, %v877_v15  ;;  %v883_v25 = vrot.slane %v882_v5, 1  ;;  %v888_v27 = vrot.slane %v887_v19, 2 }
 0x1d0   : > { %v2783_v28 = vpop.eup %2209  ;;  %2215 = vpow2.f32 %v908_v21  ;;  %v918_v30 = vadd.f32 %v917_v23, %v916_v20 }
 0x1d1   : > { %v923_v26 = vsel %vm835_vm1, %v2783_v28, 0.0  ;;  %v910_v31 = vmul.f32 1.442695, %v897_v24  ;;  %v884_v18 = vmax.f32 %v882_v5, %v883_v25  ;;  %v889_v32 = vmax.f32 %v887_v19, %v888_v27 }
 0x1d2   : > { %v924_v33 = vrot.slane %v923_v26, 4  ;;  %v919_v34 = vrot.slane %v918_v30, 2 }
 0x1d3   : > { %2217 = vpow2.f32 %v910_v31  ;;  %v898_v39 = vsub.f32 %v827_v61, %v884_v18  ;;  %v890_v40 = vrot.slane %v889_v32, 1 }
 0x1d4   : > { %v2787_v43 = vpop.eup %2211  ;;  %v920_v42 = vadd.f32 %v919_v34, %v918_v30  ;;  %v925_v44 = vadd.f32 %v924_v33, %v923_v26 }
 0x1d5   : > { %v912_v45 = vmul.f32 1.442695, %v898_v39  ;;  %v891_v46 = vmax.f32 %v889_v32, %v890_v40  ;;  %v930_v48 = vsel %vm835_vm1, %v2787_v43, 0.0 }
 0x1d6   : > { %v921_v49 = vrot.slane %v920_v42, 1  ;;  %v926_v50 = vrot.slane %v925_v44, 2  ;;  %v931_v51 = vrot.slane %v930_v48, 4 }
 0x1d7   : > { %2219 = vpow2.f32 %v912_v45  ;;  %v899_v53 = vsub.f32 %v832_v10, %v891_v46 }
 0x1d8   : > { %v2791_v54 = vpop.eup %2213  ;;  %v922_v41 = vadd.f32 %v921_v49, %v920_v42  ;;  %v927_v56 = vadd.f32 %v926_v50, %v925_v44  ;;  %v932_v57 = vadd.f32 %v931_v51, %v930_v48 }
 0x1d9   : > { %v937_v58 = vsel %vm835_vm1, %v2791_v54, 0.0  ;;  %v914_v59 = vmul.f32 1.442695, %v899_v53 }
 0x1da   : > { %v938_v60 = vrot.slane %v937_v58, 4  ;;  %2221 = vrcp.f32 %v922_v41  ;;  %v928_v61 = vrot.slane %v927_v56, 1  ;;  %v933_v62 = vrot.slane %v932_v57, 2 }
 0x1db   : > { %2223 = vpow2.f32 %v914_v59 }
 0x1dc   : > { %v929_v63 = vadd.f32 %v928_v61, %v927_v56  ;;  %v934_v0 = vadd.f32 %v933_v62, %v932_v57  ;;  %v939_v1 = vadd.f32 %v938_v60, %v937_v58  ;;  %v2239_v61 = vld [vmem:[%s2441_s10 + $0x10] sm:$0xff] }
 0x1dd   : > { %v2216_v2 = vpop.eup %2215 }
 0x1de   : > { %v944_v3 = vsel %vm835_vm1, %v2216_v2, 0.0  ;;  %2225 = vrcp.f32 %v929_v63  ;;  %v935_v4 = vrot.slane %v934_v0, 1  ;;  %v940_v6 = vrot.slane %v939_v1, 2  ;;  %v2240_v63 = vld [vmem:[%s2441_s10 + $0x18] sm:$0xff] }
 0x1df   : > { %v945_v7 = vrot.slane %v944_v3, 4 }
 0x1e0   : > { %v2218_v55 = vpop.eup %2217  ;;  %v936_v8 = vadd.f32 %v935_v4, %v934_v0  ;;  %v941_v9 = vadd.f32 %v940_v6, %v939_v1  ;;  %v2241_v1 = vld [vmem:[%s2441_s10 + $0x20] sm:$0xff] }
 0x1e1   : > { %v951_v10 = vsel %vm835_vm1, %v2218_v55, 0.0  ;;  %v946_v16 = vadd.f32 %v945_v7, %v944_v3  ;;  %v2242_v3 = vld [vmem:[%s2441_s10 + $0x28] sm:$0xff]  ;;  %s2309_s10 = smov 32  }
 0x1e2   : > { %v952_v22 = vrot.slane %v951_v10, 4  ;;  %2227 = vrcp.f32 %v936_v8  ;;  %v942_v11 = vrot.slane %v941_v9, 1 }
 0x1e3   : > { %v947_v12 = vrot.slane %v946_v16, 2 }
 0x1e4   : > { %v2220_v13 = vpop.eup %2219  ;;  %v943_v14 = vadd.f32 %v942_v11, %v941_v9  ;;  %v953_v35 = vadd.f32 %v952_v22, %v951_v10 }
 0x1e5   : > { %v958_v36 = vsel %vm835_vm1, %v2220_v13, 0.0  ;;  %v948_v37 = vadd.f32 %v947_v12, %v946_v16 }
 0x1e6   : > { %v959_v15 = vrot.slane %v958_v36, 4  ;;  %2229 = vrcp.f32 %v943_v14  ;;  %v954_v5 = vrot.slane %v953_v35, 2 }
 0x1e7   : > { %v2222_v19 = vpop.eup %2221  ;;  %v949_v20 = vrot.slane %v948_v37, 1 }
 0x1e8   : > { %v2224_v21 = vpop.eup %2223  ;;  %v973_v23 = vmul.f32 %v2222_v19, %v2778_v38  ;;  %v955_v24 = vadd.f32 %v954_v5, %v953_v35  ;;  %v960_v25 = vadd.f32 %v959_v15, %v958_v36 }
 0x1e9   : > { %v965_v27 = vsel %vm835_vm1, %v2224_v21, 0.0  ;;  %v950_v30 = vadd.f32 %v949_v20, %v948_v37  ;;  %v2308_v20 = vmov 1934713408  }
 0x1ea   : > { %v966_v26 = vrot.slane %v965_v27, 4  ;;  %988 = vxpose.xlu0.b32.start.end [1/1] (short) (narrow) %v973_v23, 8  ;;  %v956_v31 = vrot.slane %v955_v24, 1  ;;  %v961_v18 = vrot.slane %v960_v25, 2 }
 0x1eb   : > { %v2226_v32 = vpop.eup %2225  ;;  %2231 = vrcp.f32 %v950_v30 }
 0x1ec   : > { %v975_v33 = vmul.f32 %v2226_v32, %v2783_v28  ;;  %v957_v34 = vadd.f32 %v956_v31, %v955_v24  ;;  %v962_v39 = vadd.f32 %v961_v18, %v960_v25  ;;  %v967_v40 = vadd.f32 %v966_v26, %v965_v27 }
 0x1ee   : > { %1094 = vxpose.xlu0.b32.start.end [1/1] (short) (narrow) %v975_v33, 8  ;;  %2233 = vrcp.f32 %v957_v34  ;;  %v963_v42 = vrot.slane %v962_v39, 1  ;;  %v968_v38 = vrot.slane %v967_v40, 2 }
 0x1ef   : > { %v2228_v44 = vpop.eup %2227 }
 0x1f0   : > { %v977_v45 = vmul.f32 %v2228_v44, %v2787_v43  ;;  %v964_v46 = vadd.f32 %v963_v42, %v962_v39  ;;  %v969_v48 = vadd.f32 %v968_v38, %v967_v40 }
 0x1f2   : > { %1199 = vxpose.xlu1.b32.start.end [1/1] (short) (narrow) %v977_v45, 8  ;;  %2235 = vrcp.f32 %v964_v46  ;;  %v970_v49 = vrot.slane %v969_v48, 1 }
 0x1f3   : > { %v2230_v50 = vpop.eup %2229 }
 0x1f4   : > { %v979_v51 = vmul.f32 %v2230_v50, %v2791_v54  ;;  %v971_v53 = vadd.f32 %v970_v49, %v969_v48 }
 0x1f6   : > { %1304 = vxpose.xlu1.b32.start.end [1/1] (short) (narrow) %v979_v51, 8  ;;  %2237 = vrcp.f32 %v971_v53 }
 0x1f8   : > { %v2232_v28 = vpop.eup %2231 }
 0x1f9   : > { %v981_v41 = vmul.f32 %v2232_v28, %v2216_v2 }
 0x1fb   : > { %v2234_v56 = vpop.eup %2233  ;;  %1409 = vxpose.xlu0.b32.start.end [1/1] (short) (narrow) %v981_v41, 8 }
 0x1fc   : > { %v983_v57 = vmul.f32 %v2234_v56, %v2218_v55 }
 0x1fe   : > { %1514 = vxpose.xlu1.b32.start.end [1/1] (short) (narrow) %v983_v57, 8 }
 0x1ff   : > { %v2236_v43 = vpop.eup %2235 }
 0x200   : > { %v985_v58 = vmul.f32 %v2236_v43, %v2220_v13  ;;  %v2307_v13 = vmov 1983009808  }
 0x201   : > { %v1831_v14 = vunpack.c.l.s4 %v2307_v13 }
 0x202   : > { %1619 = vxpose.xlu0.b32.start.end [1/1] (short) (narrow) %v985_v58, 8 }
 0x203   : > { %v2238_v59 = vpop.eup %2237  ;;  %v1832_v35 = vunpack.c.0.s8 %v1831_v14 }
 0x204   : > { %v987_v60 = vmul.f32 %v2238_v59, %v2224_v21  ;;  %v1863_v21 = vunpack.c.l.s4 %v2308_v20 }
 0x205   : > { %v1835_v5 = vsub.s32 %v1832_v35, %v2693_v29 }
 0x206   : > { %1724 = vxpose.xlu1.b32.start.end [1/1] (short) (narrow) %v987_v60, 8  ;;  %v1864_v26 = vunpack.c.0.s8 %v1863_v21 }
 0x208   : > { %v1867_v40 = vsub.s32 %v1864_v26, %v2693_v29 }
 0x266   : > { %v1004_v54 = vpop.trf.xlu0 }
 0x267   : > { %2126 = vmatmul.mubr.msk.f32.vlgmr.msra.gmra.mxu0 %vm1020_vm3, %v1004_v54 }
 0x268   : > { %2134 = vmatpush3.msra.mxu0 %v2239_v61  ;;  %2135 = vmatprep.mubr.msk.f32.mxu0 %vm2306_vm2, %v2305_v17 }
 0x269   : > { %2143 = vmatprep.subr.mxu0 %v2305_v17 }
 0x26a   : > { %v1110_v62 = vpop.trf.xlu0 }
 0x26b   : > { %2131 = vmatmul.mubr.msk.f32.vlgmr.msra.gmra.mxu1 %vm1020_vm3, %v1110_v62 }
 0x26c   : > { %2139 = vmatpush3.msra.mxu1 %v2240_v63  ;;  %2140 = vmatprep.mubr.msk.f32.mxu1 %vm2306_vm2, %v2305_v17 }
 0x26d   : > { %2148 = vmatprep.subr.mxu1 %v2305_v17 }
 0x26e   : > { %v1215_v0 = vpop.trf.xlu1 }
 0x26f   : > { %2136 = vmatmul.mubr.msk.f32.vlgmr.msra.gmra.mxu0 %vm1020_vm3, %v1215_v0 }
 0x270   : > { %2144 = vmatpush3.msra.mxu0 %v2241_v1  ;;  %2145 = vmatprep.mubr.msk.f32.mxu0 %vm2306_vm2, %v2305_v17 }
 0x271   : > { %2153 = vmatprep.subr.mxu0 %v2305_v17 }
 0x272   : > { %v1320_v2 = vpop.trf.xlu1 }
 0x273   : > { %2141 = vmatmul.mubr.msk.f32.vlgmr.msra.gmra.mxu1 %vm1020_vm3, %v1320_v2 }
 0x274   : > { %2149 = vmatpush3.msra.mxu1 %v2242_v3  ;;  %2150 = vmatprep.mubr.msk.f32.mxu1 %vm2306_vm2, %v2305_v17 }
 0x275   : > { %2158 = vmatprep.subr.mxu1 %v2305_v17 }
 0x277   : > { %v1425_v4 = vpop.trf.xlu0 }
 0x278   : > { %2146 = vmatmul.mubr.msk.f32.vlgmr.msra.gmra.mxu0 %vm1020_vm3, %v1425_v4 }
 0x279   : > { %2154 = vmatpush3.msra.mxu0 %v2556_v47  ;;  %2155 = vmatprep.mubr.msk.f32.mxu0 %vm2306_vm2, %v2305_v17 }
 0x27a   : > { %v1530_v6 = vpop.trf.xlu1 }
 0x27b   : > { %2151 = vmatmul.mubr.msk.f32.vlgmr.msra.gmra.mxu1 %vm1020_vm3, %v1530_v6 }
 0x27c   : > { %2159 = vmatpush3.msra.mxu1 %v2577_v52  ;;  %2160 = vmatprep.mubr.msk.f32.mxu1 %vm2306_vm2, %v2305_v17 }
 0x27e   : > { %v1635_v7 = vpop.trf.xlu0 }
 0x27f   : > { %2156 = vmatmul.mubr.msk.f32.vlgmr.msra.gmra.mxu0 %vm1020_vm3, %v1635_v7 }
 0x282   : > { %v1740_v55 = vpop.trf.xlu1 }
 0x283   : > { %2161 = vmatmul.mubr.msk.f32.vlgmr.msra.gmra.mxu1 %vm1020_vm3, %v1740_v55 }
 0x327   : > { %v1090_v8 = vpop.f32.mrf.mxu0 }
 0x329   : > { %v2127_v9 = vpop.f32.mrf.mxu0 }
 0x32b   : > { %v1195_v47 = vpop.f32.mrf.mxu1 }
 0x32d   : > { %v2132_v10 = vpop.f32.mrf.mxu1 }
 0x32f   : > { %v1300_v16 = vpop.f32.mrf.mxu0 }
 0x330   : > { %v1829_v15 = vcombine.low %v1090_v8, %v1300_v16 }
 0x331   : > { %v2137_v22 = vpop.f32.mrf.mxu0 }
 0x332   : > { %v1836_v25 = vrot.slane %v1829_v15, %v1835_v5 }
 0x333   : > { %v1405_v11 = vpop.f32.mrf.mxu1 }
 0x334   : > { %v1837_v19 = vcombine.low %v1195_v47, %v1405_v11 }
 0x335   : > { %v2142_v12 = vpop.f32.mrf.mxu1 }
 0x336   : > { %v1844_v27 = vrot.slane %v1837_v19, %v1835_v5 }
 0x338   : > { %v1510_v52 = vpop.f32.mrf.mxu0  ;;  %v1861_v33 = vcombine.low %v1836_v25, %v1844_v27 }
 0x33a   : > { %v2147_v36 = vpop.f32.mrf.mxu0  ;;  %v1868_v38 = vrot.slane %v1861_v33, %v1867_v40 }
 0x33b   : > { %v1615_v17 = vpop.f32.mrf.mxu1 }
 0x33d   : > { %v2152_v37 = vpop.f32.mrf.mxu1 }
 0x33f   : > { %v1720_v23 = vpop.f32.mrf.mxu0 }
 0x340   : > { %v1845_v30 = vcombine.low %v1510_v52, %v1720_v23 }
 0x341   : > { %v2157_v24 = vpop.f32.mrf.mxu0 }
 0x342   : > { %v1852_v34 = vrot.slane %v1845_v30, %v1835_v5 }
 0x343   : > { %v1825_v31 = vpop.f32.mrf.mxu1 }
 0x344   : > { %v1853_v18 = vcombine.low %v1615_v17, %v1825_v31 }
 0x345   : > { %v2162_v32 = vpop.f32.mrf.mxu1 }
 0x346   : > { %v1860_v39 = vrot.slane %v1853_v18, %v1835_v5 }
 0x348   : > { %v1869_v42 = vcombine.low %v1852_v34, %v1860_v39 }
 0x34a   : > { %v1876_v44 = vrot.slane %v1869_v42, %v1867_v40 }
 0x34c   : > { %v1878_v45 = vcombine.high %v1868_v38, %v1876_v44  ;;  %v1877_v46 = vcombine.low %v1868_v38, %v1876_v44 }
 0x34e   : > { %1880 = vrot.lane.b32.xlu0 %v1878_v45, %s2309_s10 }
 0x3c0   : > { %v1881_v48 = vpop.permute.xlu0 %1880 }
 0x3c1   : > { %v1883_v29 = vsel %vm271_vm0, %v1877_v46, %v1881_v48 }
 0x3c2   : > { %1885 = vst.msk [vmem:[%s218_s11] sm:$0xff] %vm1884_vm4, %v1883_v29 }
 0x3c3   : > { %2256 = shalt.err (!%p2253_p3)
}
 0x3c4   : > { %s2257_s26 = scalar_lea.hbm %s2844_s15, 128  ;;  %s2261_s10 = scalar_lea.hbm %s2885_s5, 256 }
 0x3c5   : > { %p2258_p4 = scmp.ne.s32.totalorder %s2844_s15, %s2257_s26  ;;  %p2262_p9 = scmp.lt.s32.totalorder %s2844_s15, %s2885_s5 }
 0x3c6   : > { %p2263_p10 = scmp.lt.s32.totalorder %s2261_s10, %s2257_s26 }
 0x3c7   : > { %p2259_p7 = pnand %p2258_p4, %p2379_p5 }
 0x3c8   : > { %p2264_p11 = por %p2263_p10, %p2262_p9 }
 0x3c9   : > { %p2260_p8 = pneg %p2259_p7 }
 0x3cb   : > { %p2265_p12 = pnand %p2264_p11, %p2260_p8 }
 0x3cd   : > { %2268 = shalt.err (!%p2265_p12)
}
 0x3ce   : > { %2163 = dma.vmem_to_hbm [thread:$0]  (%p2379_p5), %s1901_s12, 128, %s2844_s15, %s1887_s16  }
 0x3cf PF: > { %p2169_p13 = scmp.ge.s32.totalorder %s2303_s21, 2  ;;  %s1912_s9 = sand.u32 1, %s2291_s18  }
 0x3d0   : > { %s1913_s11 = scalar_lea.sflag [#allocation3], %s1912_s9 }
 0x3d1   : > { %p2166_p0 = pnand %p2169_p13, %p2383_p6 }
 0x3d3   : > { %p2167_p1 = pneg %p2166_p0 }
 0x3d5   : > { %2286 = dma.done.wait (%p2167_p1), %s1913_s11, 128  }
 0x3d6   : > { %2288 = vsyncadd (%p2167_p1), %s1913_s11, 4294967168  ;;  %p15_p2 = scmp.ge.s32.totalorder %s2366_s24, 4   ;;  %s2888_s18 = smov %s2295_s19 }
 0x3d7   : > { %s2889_s19 = smov %s2299_s20  ;;  %s2890_s20 = smov %s2377_s27 }
 0x3d8   : > { %s2891_s21 = smov %s2366_s24  ;;  %17 = sbr.rel (!%p15_p2) target bundleno = 3 (0x3), region = 75 }
 0x3dd   :  { %1918 = vsyncpa [#allocation3], 1 }
 0x3de   :  { %1920 = vsyncpa [#allocation3 + $0x1], 1 }

</bundles_post_ra>
